<compile_context>
chip_gen: v7x
topology: tpu7x:2x2x1
jax: 0.10.0
libtpu: 0.0.40
codegen_flags: <defaults>
</compile_context>

<pallas_src>
import functools

import jax
import jax.numpy as jnp
from jax.experimental import pallas as pl
from jax.experimental.pallas import tpu as pltpu


# ----------------------------------------------------------------------------
# Fused 3-layer MLP kernel (one (tm, d_in) batch tile per grid step)
# ----------------------------------------------------------------------------

def _trend_mlp_kernel(x_ref, w1_ref, b1_ref, w2_ref, b2_ref, w3_ref, b3_ref,
                      o_ref):
    # x_ref: (tm, d_in) bf16; w_i: (in, out) bf16; b_i: (1, out) f32.
    x = x_ref[...]
    h1 = jnp.dot(x, w1_ref[...], preferred_element_type=jnp.float32) + b1_ref[...]
    h1 = jnp.maximum(h1, 0.0).astype(jnp.bfloat16)                  # ReLU, back to bf16 for MXU
    h2 = jnp.dot(h1, w2_ref[...], preferred_element_type=jnp.float32) + b2_ref[...]
    h2 = jnp.maximum(h2, 0.0).astype(jnp.bfloat16)                  # ReLU
    o_ref[...] = (jnp.dot(h2, w3_ref[...], preferred_element_type=jnp.float32)
                  + b3_ref[...])


def _round_up(n, m):
    return ((n + m - 1) // m) * m


def trend_predictor_forward(params, context, t=None, *, output_dim, seq_length):
    """Fused TrendPredictor forward.

    context: (B, input_dim) float32
    t:       unused by the reference module's forward (kept for signature parity)
    returns: (B, output_dim, seq_length) float32
    """
    del t  # unused in the PyTorch reference forward
    B, d_in = context.shape
    h1_dim = params['w1'].shape[-1]          # 128
    h2_dim = params['w2'].shape[-1]          # 256
    d_out = params['w3'].shape[-1]           # output_dim * seq_length

    # Batch tile: multiple of 16 (bf16 sublane packing), capped at 512.
    tm = min(512, _round_up(B, 16))
    B_pad = _round_up(B, tm)
    grid = (B_pad // tm,)

    # bf16 input for the MXU (accumulation stays f32 inside the kernel).
    x = context.astype(jnp.bfloat16)
    if B_pad != B:
        x = jnp.pad(x, ((0, B_pad - B), (0, 0)))

    # x / out tiled over batch; weights & biases resident across all grid steps.
    x_spec = pl.BlockSpec((tm, d_in), lambda i: (i, 0))
    o_spec = pl.BlockSpec((tm, d_out), lambda i: (i, 0))
    w1_spec = pl.BlockSpec((d_in, h1_dim), lambda i: (0, 0))
    b1_spec = pl.BlockSpec((1, h1_dim), lambda i: (0, 0))
    w2_spec = pl.BlockSpec((h1_dim, h2_dim), lambda i: (0, 0))
    b2_spec = pl.BlockSpec((1, h2_dim), lambda i: (0, 0))
    w3_spec = pl.BlockSpec((h2_dim, d_out), lambda i: (0, 0))
    b3_spec = pl.BlockSpec((1, d_out), lambda i: (0, 0))

    flops = 2 * B_pad * (d_in * h1_dim + h1_dim * h2_dim + h2_dim * d_out)
    bytes_accessed = (B_pad * d_in * 2                              # x (bf16)
                      + (d_in * h1_dim + h1_dim * h2_dim + h2_dim * d_out) * 2   # weights (bf16)
                      + (h1_dim + h2_dim + d_out) * 4               # biases (f32)
                      + B_pad * d_out * 4)                          # output (f32)

    flat = pl.pallas_call(
        _trend_mlp_kernel,
        out_shape=jax.ShapeDtypeStruct((B_pad, d_out), jnp.float32),
        grid=grid,
        in_specs=[x_spec, w1_spec, b1_spec, w2_spec, b2_spec, w3_spec, b3_spec],
        out_specs=o_spec,
        compiler_params=pltpu.CompilerParams(
            dimension_semantics=("parallel",),
            vmem_limit_bytes=32 * 1024 * 1024),
        cost_estimate=pl.CostEstimate(flops=flops, transcendentals=0,
                                      bytes_accessed=bytes_accessed),
    )(x,
      params['w1'], params['b1'],
      params['w2'], params['b2'],
      params['w3'], params['b3'])

    # torch: out.view(-1, output_dim, seq_length)  (row-major, metadata-only)
    return flat[:B].reshape(B, output_dim, seq_length)


# ----------------------------------------------------------------------------
# Parameters (deterministic synthetic init; weights stored (in, out), bf16)
# ----------------------------------------------------------------------------

def init_params(key, input_dim, output_dim, seq_length):
    h1, h2 = 128, 256
    d_out = output_dim * seq_length
    k = jax.random.split(key, 6)

    def lin(kw, kb, fan_in, fan_out):
        # nn.Linear default scale: U(-1/sqrt(in), 1/sqrt(in))
        bound = 1.0 / (fan_in ** 0.5)
        w = jax.random.uniform(kw, (fan_in, fan_out), jnp.float32, -bound, bound)
        b = jax.random.uniform(kb, (1, fan_out), jnp.float32, -bound, bound)
        # Weights stored bf16 for the MXU; biases stay f32 (f32 accumulation).
        return w.astype(jnp.bfloat16), b

    w1, b1 = lin(k[0], k[1], input_dim, h1)
    w2, b2 = lin(k[2], k[3], h1, h2)
    w3, b3 = lin(k[4], k[5], h2, d_out)
    # NOTE: output_dim / seq_length intentionally NOT in the pytree (static).
    return dict(w1=w1, b1=b1, w2=w2, b2=b2, w3=w3, b3=b3)


# ----------------------------------------------------------------------------
# Main
# ----------------------------------------------------------------------------

if __name__ == "__main__":
    # Small shapes consistent with the module; output_dim*seq_length = 128 keeps
    # the kernel's final store lane-dense.
    B, input_dim, output_dim, seq_length = 2, 32, 8, 16

    key = jax.random.PRNGKey(0)
    kp, kc, kt = jax.random.split(key, 3)
    params = init_params(kp, input_dim, output_dim, seq_length)

    context = jax.random.normal(kc, (B, input_dim), dtype=jnp.float32)
    t = jax.random.uniform(kt, (B,), dtype=jnp.float32)   # unused by forward

    fwd = jax.jit(functools.partial(trend_predictor_forward,
                                    output_dim=output_dim,
                                    seq_length=seq_length))
    out = fwd(params, context, t)
    jax.block_until_ready(out)

    assert out.shape == (B, output_dim, seq_length), out.shape
    assert bool(jnp.all(jnp.isfinite(out)))

    # Reference in plain JAX with the SAME bf16-weight / f32-accumulate math.
    xb = context.astype(jnp.bfloat16)
    r1 = jnp.dot(xb, params['w1'], preferred_element_type=jnp.float32) + params['b1']
    r1 = jnp.maximum(r1, 0.0).astype(jnp.bfloat16)
    r2 = jnp.dot(r1, params['w2'], preferred_element_type=jnp.float32) + params['b2']
    r2 = jnp.maximum(r2, 0.0).astype(jnp.bfloat16)
    ref = (jnp.dot(r2, params['w3'], preferred_element_type=jnp.float32)
           + params['b3']).reshape(B, output_dim, seq_length)
    assert bool(jnp.allclose(out, ref, atol=2e-2, rtol=2e-2)), \
        float(jnp.max(jnp.abs(out - ref)))

    print("KERNEL_OK")
</pallas_src>

<mosaic_0001>
module attributes {stable_mosaic.version = 11 : i64} {
  func.func @_trend_mlp_kernel(%arg0: i32, %arg1: memref<16x32xbf16, #tpu.memory_space<vmem>>, %arg2: memref<32x128xbf16, #tpu.memory_space<vmem>>, %arg3: memref<1x128xf32, #tpu.memory_space<vmem>>, %arg4: memref<128x256xbf16, #tpu.memory_space<vmem>>, %arg5: memref<1x256xf32, #tpu.memory_space<vmem>>, %arg6: memref<256x128xbf16, #tpu.memory_space<vmem>>, %arg7: memref<1x128xf32, #tpu.memory_space<vmem>>, %arg8: memref<16x128xf32, #tpu.memory_space<vmem>>) attributes {dimension_semantics = [#tpu.dimension_semantics<parallel>], iteration_bounds = array<i64: 1>, scalar_prefetch = 0 : i64, scratch_operands = 0 : i64, tpu.core_type = #tpu.core_type<tc>, window_params = [{transform_indices = @transform_0, window_bounds = array<i64: 16, 32>}, {pipeline_mode = #tpu.pipeline_mode<synchronous>, transform_indices = @transform_1, window_bounds = array<i64: 32, 128>}, {pipeline_mode = #tpu.pipeline_mode<synchronous>, transform_indices = @transform_2, window_bounds = array<i64: 1, 128>}, {pipeline_mode = #tpu.pipeline_mode<synchronous>, transform_indices = @transform_3, window_bounds = array<i64: 128, 256>}, {pipeline_mode = #tpu.pipeline_mode<synchronous>, transform_indices = @transform_4, window_bounds = array<i64: 1, 256>}, {pipeline_mode = #tpu.pipeline_mode<synchronous>, transform_indices = @transform_5, window_bounds = array<i64: 256, 128>}, {pipeline_mode = #tpu.pipeline_mode<synchronous>, transform_indices = @transform_6, window_bounds = array<i64: 1, 128>}, {transform_indices = @transform_7, window_bounds = array<i64: 16, 128>}]} {
    %c0 = arith.constant 0 : index
    %c0_0 = arith.constant 0 : index
    %0 = vector.load %arg1[%c0, %c0_0] : memref<16x32xbf16, #tpu.memory_space<vmem>>, vector<16x32xbf16>
    %c0_1 = arith.constant 0 : index
    %c0_2 = arith.constant 0 : index
    %1 = vector.load %arg2[%c0_1, %c0_2] : memref<32x128xbf16, #tpu.memory_space<vmem>>, vector<32x128xbf16>
    %cst = arith.constant dense<0.000000e+00> : vector<16x128xf32>
    %2 = tpu.matmul %0, %1, %cst {dimension_numbers = #tpu.dot_dimension_numbers<[1], [0], [0], [1], [0, 0, 1, 1], [], []>} : vector<16x32xbf16>, vector<32x128xbf16>, vector<16x128xf32> -> vector<16x128xf32>
    %c0_3 = arith.constant 0 : index
    %c0_4 = arith.constant 0 : index
    %3 = vector.load %arg3[%c0_3, %c0_4] : memref<1x128xf32, #tpu.memory_space<vmem>>, vector<1x128xf32>
    %4 = vector.broadcast %3 : vector<1x128xf32> to vector<16x128xf32>
    %5 = arith.addf %2, %4 : vector<16x128xf32>
    %cst_5 = arith.constant 0.000000e+00 : f32
    %6 = vector.broadcast %cst_5 : f32 to vector<16x128xf32>
    %7 = arith.maximumf %5, %6 : vector<16x128xf32>
    %8 = arith.truncf %7 : vector<16x128xf32> to vector<16x128xbf16>
    %c0_6 = arith.constant 0 : index
    %c0_7 = arith.constant 0 : index
    %9 = vector.load %arg4[%c0_6, %c0_7] : memref<128x256xbf16, #tpu.memory_space<vmem>>, vector<128x256xbf16>
    %cst_8 = arith.constant dense<0.000000e+00> : vector<16x256xf32>
    %10 = tpu.matmul %8, %9, %cst_8 {dimension_numbers = #tpu.dot_dimension_numbers<[1], [0], [0], [1], [0, 0, 1, 1], [], []>} : vector<16x128xbf16>, vector<128x256xbf16>, vector<16x256xf32> -> vector<16x256xf32>
    %c0_9 = arith.constant 0 : index
    %c0_10 = arith.constant 0 : index
    %11 = vector.load %arg5[%c0_9, %c0_10] : memref<1x256xf32, #tpu.memory_space<vmem>>, vector<1x256xf32>
    %12 = vector.broadcast %11 : vector<1x256xf32> to vector<16x256xf32>
    %13 = arith.addf %10, %12 : vector<16x256xf32>
    %cst_11 = arith.constant 0.000000e+00 : f32
    %14 = vector.broadcast %cst_11 : f32 to vector<16x256xf32>
    %15 = arith.maximumf %13, %14 : vector<16x256xf32>
    %16 = arith.truncf %15 : vector<16x256xf32> to vector<16x256xbf16>
    %c0_12 = arith.constant 0 : index
    %c0_13 = arith.constant 0 : index
    %17 = vector.load %arg6[%c0_12, %c0_13] : memref<256x128xbf16, #tpu.memory_space<vmem>>, vector<256x128xbf16>
    %cst_14 = arith.constant dense<0.000000e+00> : vector<16x128xf32>
    %18 = tpu.matmul %16, %17, %cst_14 {dimension_numbers = #tpu.dot_dimension_numbers<[1], [0], [0], [1], [0, 0, 1, 1], [], []>} : vector<16x256xbf16>, vector<256x128xbf16>, vector<16x128xf32> -> vector<16x128xf32>
    %c0_15 = arith.constant 0 : index
    %c0_16 = arith.constant 0 : index
    %19 = vector.load %arg7[%c0_15, %c0_16] : memref<1x128xf32, #tpu.memory_space<vmem>>, vector<1x128xf32>
    %20 = vector.broadcast %19 : vector<1x128xf32> to vector<16x128xf32>
    %21 = arith.addf %18, %20 : vector<16x128xf32>
    %c0_17 = arith.constant 0 : index
    %c0_18 = arith.constant 0 : index
    %22 = vector.load %arg8[%c0_17, %c0_18] : memref<16x128xf32, #tpu.memory_space<vmem>>, vector<16x128xf32>
    tpu.vector_store %arg8[%c0_17, %c0_18], %21 {strides = array<i32>} : memref<16x128xf32, #tpu.memory_space<vmem>>, vector<16x128xf32>,
    return
  }
  func.func @transform_0(%arg0: i32) -> (i32, i32) {
    %c0_i32 = arith.constant 0 : i32
    %c0_i32_0 = arith.constant 0 : i32
    return %arg0, %c0_i32 : i32, i32
  }
  func.func @transform_1(%arg0: i32) -> (i32, i32) {
    %c0_i32 = arith.constant 0 : i32
    %c0_i32_0 = arith.constant 0 : i32
    %c0_i32_1 = arith.constant 0 : i32
    return %c0_i32, %c0_i32_0 : i32, i32
  }
  func.func @transform_2(%arg0: i32) -> (i32, i32) {
    %c0_i32 = arith.constant 0 : i32
    %c0_i32_0 = arith.constant 0 : i32
    %c0_i32_1 = arith.constant 0 : i32
    return %c0_i32, %c0_i32_0 : i32, i32
  }
  func.func @transform_3(%arg0: i32) -> (i32, i32) {
    %c0_i32 = arith.constant 0 : i32
    %c0_i32_0 = arith.constant 0 : i32
    %c0_i32_1 = arith.constant 0 : i32
    return %c0_i32, %c0_i32_0 : i32, i32
  }
  func.func @transform_4(%arg0: i32) -> (i32, i32) {
    %c0_i32 = arith.constant 0 : i32
    %c0_i32_0 = arith.constant 0 : i32
    %c0_i32_1 = arith.constant 0 : i32
    return %c0_i32, %c0_i32_0 : i32, i32
  }
  func.func @transform_5(%arg0: i32) -> (i32, i32) {
    %c0_i32 = arith.constant 0 : i32
    %c0_i32_0 = arith.constant 0 : i32
    %c0_i32_1 = arith.constant 0 : i32
    return %c0_i32, %c0_i32_0 : i32, i32
  }
  func.func @transform_6(%arg0: i32) -> (i32, i32) {
    %c0_i32 = arith.constant 0 : i32
    %c0_i32_0 = arith.constant 0 : i32
    %c0_i32_1 = arith.constant 0 : i32
    return %c0_i32, %c0_i32_0 : i32, i32
  }
  func.func @transform_7(%arg0: i32) -> (i32, i32) {
    %c0_i32 = arith.constant 0 : i32
    %c0_i32_0 = arith.constant 0 : i32
    return %arg0, %c0_i32 : i32, i32
  }
}

</mosaic_0001>

<bundles_post_ra>
// kernel: trend_predictor_forward.1
= control target key start
LH: loop header
LB: loop body
LE: loop exit
PB: predicated region body
PF: predicated region fallthrough
CT: control target
= control target key end

     0   :  { %12 = vsyncpa [#allocation3], 0  ;;  %s742_s0 = inlined_call_operand.vmem [shape: bf16[16,32], index: 0, kind: input, shape index: {}]   ;;  %s743_s1 = inlined_call_operand.vmem [shape: bf16[32,128], index: 1, kind: input, shape index: {}]   ;;  %s744_s2 = inlined_call_operand.vmem [shape: f32[1,128], index: 2, kind: input, shape index: {}]   ;;  %s745_s3 = inlined_call_operand.hbm [shape: bf16[128,256], index: 3, kind: input, shape index: {}]   ;;  %s746_s4 = inlined_call_operand.vmem [shape: f32[1,256], index: 4, kind: input, shape index: {}]   ;;  %s747_s5 = inlined_call_operand.hbm [shape: bf16[256,128], index: 5, kind: input, shape index: {}]   ;;  %s748_s6 = inlined_call_operand.vmem [shape: f32[1,128], index: 6, kind: input, shape index: {}]   ;;  %s749_s7 = inlined_call_operand.vmem [shape: f32[16,128], index: 7, kind: output, shape index: {}]  }
   0x1   :  { %13 = vsyncpa [#allocation5], 0  ;;  %s645_s24 = smov [#allocation2]   ;;  %s597_s28 = scalar_lea.hbm %s745_s3, 2048 }
   0x2   :  { %s25_s25 = sshll.u32 %s645_s24, 4  ;;  %p598_p0 = scmp.ne.s32.totalorder %s745_s3, %s597_s28  ;;  %s26_s25 = int_to_ptr.vmem [resolvable:$true] %s25_s25 }
   0x3   :  { %p601_p1 = scmp.lt.u32.totalorder %s597_s28, %s745_s3 }
   0x5   :  { %p603_p2 = pnand %p601_p1, %p598_p0 }
   0x7   :  { %606 = shalt.err (!%p603_p2)
}
   0x8   :  { %s607_s10 = scalar_lea.vmem %s26_s25, 2048  ;;  %p612_p4 = scmp.lt.s32.totalorder %s26_s25, %s26_s25 }
   0x9   :  { %p608_p3 = scmp.ne.s32.totalorder %s26_s25, %s607_s10  ;;  %p613_p5 = scmp.lt.s32.totalorder %s607_s10, %s607_s10 }
   0xb   :  { %p614_p6 = por %p613_p5, %p612_p4 }
   0xd   :  { %p615_p7 = pnand %p614_p6, %p608_p3 }
   0xf   :  { %618 = shalt.err (!%p615_p7)
}
  0x10   :  { %s646_s11 = smov 128   ;;  %s647_s12 = smov 8  }
  0x11   :  { %31 = dma.hbm_to_vmem [thread:$0]  %s745_s3, 2048, %s26_s25, [#allocation3], %s646_s11, %s646_s11, %s647_s12  }
  0x12   :  { %s648_s15 = smov [#allocation4]   ;;  %s619_s19 = scalar_lea.hbm %s747_s5, 2048 }
  0x13   :  { %s39_s16 = sshll.u32 %s648_s15, 4  ;;  %p620_p8 = scmp.ne.s32.totalorder %s747_s5, %s619_s19  ;;  %s40_s16 = int_to_ptr.vmem [resolvable:$true] %s39_s16 }
  0x14   :  { %p623_p9 = scmp.lt.u32.totalorder %s619_s19, %s747_s5 }
  0x16   :  { %p625_p10 = pnand %p623_p9, %p620_p8 }
  0x18   :  { %628 = shalt.err (!%p625_p10)
}
  0x19   :  { %s629_s24 = scalar_lea.vmem %s40_s16, 2048  ;;  %p634_p12 = scmp.lt.s32.totalorder %s40_s16, %s40_s16 }
  0x1a   :  { %p630_p11 = scmp.ne.s32.totalorder %s40_s16, %s629_s24  ;;  %p635_p13 = scmp.lt.s32.totalorder %s629_s24, %s629_s24 }
  0x1c   :  { %p636_p0 = por %p635_p13, %p634_p12 }
  0x1e   :  { %p637_p1 = pnand %p636_p0, %p630_p11 }
  0x20   :  { %640 = shalt.err (!%p637_p1)
}
  0x21   :  { %s649_s3 = smov 64   ;;  %s650_s25 = smov 4  }
  0x22   :  { %45 = dma.hbm_to_vmem [thread:$0]  %s747_s5, 2048, %s40_s16, [#allocation5], %s649_s3, %s649_s3, %s650_s25  }
  0x23   :  { %641 = dma.done.wait [#allocation3], 2048  }
  0x24   :  { %642 = vsyncadd [#allocation3], 4294965248 }
  0x25   :  { %643 = dma.done.wait [#allocation5], 2048  }
  0x26   :  { %644 = vsyncadd [#allocation5], 4294965248  ;;  %v651_v0 = vmov 0.0   ;;  %vm652_vm0 = vmmov 0   ;;  %v554_v1 = vld [vmem:[%s743_s1] sm:$0xff]   ;;  %v555_v2 = vld [vmem:[%s743_s1 + $0x8] sm:$0xff]   ;;  %v151_v47 = vlaneseq }
  0x27   :  { %537 = vmatprep.subr.bf16.mxu0 %v651_v0  ;;  %541 = vmatprep.mubr.msk.bf16.mxu0 %vm652_vm0, %v651_v0  ;;  %v557_v3 = vld [vmem:[#allocation2 + $0x4] ss:$8 sps:$4 sm:$0xff]   ;;  %v559_v4 = vld [vmem:[#allocation2] ss:$8 sps:$4 sm:$0xff]   ;;  %v560_v6 = vld [vmem:[#allocation2 + $0x14] ss:$8 sps:$4 sm:$0xff]  }
  0x28   :  { %538 = vmatpush3.bf16.msra.mxu0 %v554_v1  ;;  %v556_v5 = vld [vmem:[%s742_s0] sm:$0xff]   ;;  %241 = vmatprep.subr.bf16.mxu1 %v557_v3  ;;  %vm85_vm1 = vcmask 261120   ;;  %v562_v7 = vld [vmem:[#allocation2 + $0x10] ss:$8 sps:$4 sm:$0xff]   ;;  %v566_v10 = vld [vmem:[#allocation2 + $0x34] ss:$8 sps:$4 sm:$0xff]  }
  0x29   :  { %539 = vmatprep.subr.bf16.mxu0 %v651_v0  ;;  %242 = vmatpush1.bf16.msra.mxu1 %v559_v4  ;;  %v563_v8 = vld [vmem:[#allocation2 + $0x24] ss:$8 sps:$4 sm:$0xff]   ;;  %v565_v9 = vld [vmem:[#allocation2 + $0x20] ss:$8 sps:$4 sm:$0xff]   ;;  %v568_v11 = vld [vmem:[#allocation2 + $0x30] ss:$8 sps:$4 sm:$0xff]  }
  0x2a   :  { %243 = vmatprep.subr.bf16.mxu1 %v560_v6  ;;  %v569_v12 = vld [vmem:[#allocation2 + $0x44] ss:$8 sps:$4 sm:$0xff]   ;;  %v571_v13 = vld [vmem:[#allocation2 + $0x40] ss:$8 sps:$4 sm:$0xff]   ;;  %v572_v14 = vld [vmem:[#allocation2 + $0x54] ss:$8 sps:$4 sm:$0xff]  }
  0x2b   :  { %v574_v15 = vld [vmem:[#allocation2 + $0x50] ss:$8 sps:$4 sm:$0xff]   ;;  %v575_v16 = vld [vmem:[#allocation2 + $0x64] ss:$8 sps:$4 sm:$0xff]   ;;  %v577_v17 = vld [vmem:[#allocation2 + $0x60] ss:$8 sps:$4 sm:$0xff]  }
  0x2c   :  { %540 = vmatpush3.bf16.msra.mxu0 %v555_v2  ;;  %v578_v18 = vld [vmem:[#allocation2 + $0x74] ss:$8 sps:$4 sm:$0xff]   ;;  %v580_v19 = vld [vmem:[#allocation2 + $0x70] ss:$8 sps:$4 sm:$0xff]   ;;  %v653_v20 = vmov 0   ;;  %v581_v21 = vld [vmem:[#allocation4 + $0x40] sm:$0xff]  }
  0x2d   :  { %244 = vmatpush1.bf16.msra.mxu1 %v562_v7  ;;  %273 = vmatprep.mubr.bf16.mxu1 %v653_v20  ;;  %v582_v22 = vld [vmem:[#allocation4] sm:$0xff]   ;;  %v583_v23 = vld [vmem:[#allocation4 + $0x48] sm:$0xff]   ;;  %v585_v25 = vld [vmem:[#allocation4 + $0x50] sm:$0xff]   ;;  %v152_v48 = vshrl.u32 %v151_v47, 7 }
  0x2e   :  { %245 = vmatprep.subr.bf16.mxu1 %v563_v8  ;;  %515 = vmatprep.subr.bf16.mxu0 %v581_v21  ;;  %v584_v24 = vld [vmem:[#allocation4 + $0x8] sm:$0xff]   ;;  %v586_v26 = vld [vmem:[#allocation4 + $0x10] sm:$0xff]   ;;  %v587_v27 = vld [vmem:[#allocation4 + $0x58] sm:$0xff]  }
  0x2f   :  { %542 = vmatmul.mubr.msk.bf16.vlgmr.msra.gmra.mrb[0].mxu0 %vm85_vm1, %v556_v5  ;;  %v588_v28 = vld [vmem:[#allocation4 + $0x18] sm:$0xff]   ;;  %v589_v29 = vld [vmem:[#allocation4 + $0x60] sm:$0xff]   ;;  %v591_v31 = vld [vmem:[#allocation4 + $0x68] sm:$0xff]   ;;  %v153_v49 = vsub.s32 0, %v152_v48  ;;  %v157_v51 = vsub.s32 1, %v152_v48 }
  0x30   :  { %516 = vmatpush3.bf16.msra.mxu0 %v582_v22  ;;  %v590_v30 = vld [vmem:[#allocation4 + $0x20] sm:$0xff]   ;;  %v592_v42 = vld [vmem:[#allocation4 + $0x28] sm:$0xff]   ;;  %v593_v43 = vld [vmem:[#allocation4 + $0x70] sm:$0xff]  }
  0x31   :  { %246 = vmatpush1.bf16.msra.mxu1 %v565_v9  ;;  %517 = vmatprep.subr.bf16.mxu0 %v583_v23  ;;  %v474_v32 = vld [vmem:[%s744_s2] ss:$0 sm:$0xff]  ;;  %v594_v44 = vld [vmem:[#allocation4 + $0x30] sm:$0xff]   ;;  %v595_v45 = vld [vmem:[#allocation4 + $0x78] sm:$0xff]  }
  0x32   :  { %247 = vmatprep.subr.bf16.mxu1 %v566_v10  ;;  %v596_v46 = vld [vmem:[#allocation4 + $0x38] sm:$0xff]   ;;  %v149_v50 = vld [vmem:[%s746_s4] sm:$0x3] }
  0x33   :  { %v154_v52 = vrot.slane %v149_v50, %v153_v49  ;;  %v158_v53 = vrot.slane %v149_v50, %v157_v51  ;;  %v495_v5 = vld [vmem:[%s748_s6] ss:$0 sm:$0xff] }
  0x34   :  { %518 = vmatpush3.bf16.msra.mxu0 %v584_v24 }
  0x35   :  { %248 = vmatpush1.bf16.msra.mxu1 %v568_v11  ;;  %519 = vmatprep.subr.bf16.mxu0 %v585_v25 }
  0x36   :  { %249 = vmatprep.subr.bf16.mxu1 %v569_v12 }
  0x38   :  { %520 = vmatpush3.bf16.msra.mxu0 %v586_v26 }
  0x39   :  { %250 = vmatpush1.bf16.msra.mxu1 %v571_v13  ;;  %521 = vmatprep.subr.bf16.mxu0 %v587_v27 }
  0x3a   :  { %251 = vmatprep.subr.bf16.mxu1 %v572_v14 }
  0x3c   :  { %522 = vmatpush3.bf16.msra.mxu0 %v588_v28 }
  0x3d   :  { %252 = vmatpush1.bf16.msra.mxu1 %v574_v15  ;;  %523 = vmatprep.subr.bf16.mxu0 %v589_v29 }
  0x3e   :  { %253 = vmatprep.subr.bf16.mxu1 %v575_v16 }
  0x40   :  { %524 = vmatpush3.bf16.msra.mxu0 %v590_v30 }
  0x41   :  { %254 = vmatpush1.bf16.msra.mxu1 %v577_v17  ;;  %525 = vmatprep.subr.bf16.mxu0 %v591_v31 }
  0x42   :  { %255 = vmatprep.subr.bf16.mxu1 %v578_v18 }
  0x44   :  { %526 = vmatpush3.bf16.msra.mxu0 %v592_v42 }
  0x45   :  { %256 = vmatpush1.bf16.msra.mxu1 %v580_v19  ;;  %527 = vmatprep.subr.bf16.mxu0 %v593_v43 }
  0x48   :  { %528 = vmatpush3.bf16.msra.mxu0 %v594_v44 }
  0x49   :  { %529 = vmatprep.subr.bf16.mxu0 %v595_v45 }
  0x4c   :  { %530 = vmatpush3.bf16.msra.mxu0 %v596_v46 }
 0x102   :  { %v123_v33 = vpop.f32.mrb[0].mxu0 }
 0x103   :  { %v124_v34 = vadd.f32 %v474_v32, %v123_v33  ;;  %v543_v35 = vpop.f32.mrb[1].mxu0 }
 0x104   :  { %v126_v36 = vpop.f32.mrb[2].mxu0 }
 0x105   :  { %v127_v37 = vadd.f32 %v474_v32, %v126_v36  ;;  %v544_v38 = vpop.f32.mrb[3].mxu0  ;;  %v130_v39 = vmax.f32 %v124_v34, 0.0 }
 0x107   :  { %v131_v40 = vmax.f32 %v127_v37, 0.0 }
 0x109   :  { %v132_v41 = vpack.c.bf16 %v131_v40, %v130_v39 }
 0x10b   :  { %274 = vmatmul.mubr.bf16.vlgmr.msra.gmra.mrb[0].mxu1 %v132_v41 }
 0x1de   :  { %v275_v54 = vpop.f32.mrb[0].mxu1 }
 0x1df   :  { %v276_v55 = vadd.f32 %v275_v54, %v154_v52  ;;  %v277_v56 = vpop.f32.mrb[1].mxu1 }
 0x1e0   :  { %v278_v57 = vadd.f32 %v277_v56, %v158_v53  ;;  %v279_v58 = vpop.f32.mrb[2].mxu1 }
 0x1e1   :  { %v280_v59 = vadd.f32 %v279_v58, %v154_v52  ;;  %v281_v60 = vpop.f32.mrb[3].mxu1  ;;  %v284_v62 = vmax.f32 %v276_v55, 0.0 }
 0x1e2   :  { %v282_v61 = vadd.f32 %v281_v60, %v158_v53  ;;  %v285_v0 = vmax.f32 %v278_v57, 0.0 }
 0x1e3   :  { %v286_v63 = vmax.f32 %v280_v59, 0.0 }
 0x1e4   :  { %v287_v1 = vmax.f32 %v282_v61, 0.0 }
 0x1e5   :  { %v288_v2 = vpack.c.bf16 %v286_v63, %v284_v62 }
 0x1e6   :  { %v289_v3 = vpack.c.bf16 %v287_v1, %v285_v0 }
 0x1e8   :  { %457 = vmatprep.mubr.bf16.mxu0 %v289_v3 }
 0x1e9   :  { %458 = vmatmul.mubr.bf16.vlgmr.msra.gmra.mrb[4].mxu0 %v288_v2 }
 0x2bc   :  { %v531_v4 = vpop.f32.mrb[4].mxu0 }
 0x2bd   :  { %v532_v6 = vpop.f32.mrb[5].mxu0 }
 0x2be   :  { %v533_v7 = vadd.f32 %v532_v6, %v531_v4  ;;  %v534_v8 = vpop.f32.mrb[6].mxu0 }
 0x2bf   :  { %v535_v9 = vpop.f32.mrb[7].mxu0 }
 0x2c0   :  { %v460_v10 = vadd.f32 %v533_v7, %v495_v5  ;;  %v536_v11 = vadd.f32 %v535_v9, %v534_v8 }
 0x2c2   :  { %466 = vst [vmem:[%s749_s7] sm:$0xff] %v460_v10  ;;  %v463_v12 = vadd.f32 %v536_v11, %v495_v5 }
 0x2c4   :  { %467 = vst [vmem:[%s749_s7 + $0x8] sm:$0xff] %v463_v12 }
 0x2c5   :  { %472 = vsyncpa [#allocation3], 1 }
 0x2c6   :  { %473 = vsyncpa [#allocation5], 1 }

</bundles_post_ra>
